<compile_context>
chip_gen: v6e
topology: v6e:2x2x1
jax: 0.10.0
libtpu: 0.0.40
codegen_flags: <defaults>
</compile_context>

<pallas_src>
import jax
import jax.numpy as jnp
import numpy as np
from jax import lax
from jax.experimental import pallas as pl
from jax.experimental.pallas import tpu as pltpu


# --------------------------------------------------------------------------- #
# Kernels
# --------------------------------------------------------------------------- #
def cs_kernel(params_ref, rgb_ref, ir_ref, out_ref):
    """Single-pass kernel: one (batch-tile, channel-tile) block per grid step.

    params_ref: SMEM f32[4] = [w_rgb, b_rgb, w_ir, b_ir]  (Conv1d k=1 weight/bias)
    rgb_ref, ir_ref: VMEM (tb, tc, HW)
    out_ref:         VMEM (tb, 2, tc, HW)  [slot 0 = switch_RGB, slot 1 = switch_IR]
    """
    rgb = rgb_ref[...]                                   # (tb, tc, HW)
    ir = ir_ref[...]
    inv_hw = jnp.float32(1.0 / rgb.shape[-1])

    # GAP over the flattened spatial (lane) axis, accumulated in f32 without
    # materializing a cast copy of the whole slab.
    gap_rgb = jnp.sum(rgb, axis=-1, dtype=jnp.float32, keepdims=True) * inv_hw
    gap_ir = jnp.sum(ir, axis=-1, dtype=jnp.float32, keepdims=True) * inv_hw

    # Conv1d(1,1,1) == scalar affine; sigmoid(z) > 0.5  <=>  z > 0 (no EUP needed).
    mask_rgb = (params_ref[0] * gap_rgb + params_ref[1]) > 0.0   # (tb, tc, 1) bool
    mask_ir = (params_ref[2] * gap_ir + params_ref[3]) > 0.0

    out_ref[:, 0] = jnp.where(mask_rgb, rgb, ir)
    out_ref[:, 1] = jnp.where(mask_ir, ir, rgb)


def _make_gap_mask_kernel(HW, hw_t):
    """Two-pass path, pass 1: stream HW tiles, accumulate GAP, emit per-(b,c) masks."""
    ragged = (HW % hw_t) != 0

    def gap_mask_kernel(params_ref, rgb_ref, ir_ref, mask_ref, acc_ref):
        h = pl.program_id(1)

        @pl.when(h == 0)
        def _():
            acc_ref[...] = jnp.zeros_like(acc_ref)

        rgb = rgb_ref[...]                               # (1, C, hw_t)
        ir = ir_ref[...]
        if ragged:
            # Zero out the out-of-bounds lane tail of the last (clipped) block so
            # it does not contaminate the GAP sum.
            idx = lax.broadcasted_iota(jnp.int32, rgb.shape, 2) + h * hw_t
            valid = idx < HW
            rgb = jnp.where(valid, rgb, jnp.zeros_like(rgb))
            ir = jnp.where(valid, ir, jnp.zeros_like(ir))

        acc_ref[:, 0] = acc_ref[:, 0] + jnp.sum(rgb, axis=-1, dtype=jnp.float32)
        acc_ref[:, 1] = acc_ref[:, 1] + jnp.sum(ir, axis=-1, dtype=jnp.float32)

        @pl.when(h == pl.num_programs(1) - 1)
        def _():
            inv_hw = jnp.float32(1.0 / HW)
            z_rgb = params_ref[0] * (acc_ref[:, 0] * inv_hw) + params_ref[1]
            z_ir = params_ref[2] * (acc_ref[:, 1] * inv_hw) + params_ref[3]
            mask_ref[:, 0] = (z_rgb > 0.0).astype(jnp.float32)
            mask_ref[:, 1] = (z_ir > 0.0).astype(jnp.float32)

    return gap_mask_kernel


def select_kernel(mask_ref, rgb_ref, ir_ref, out_ref):
    """Two-pass path, pass 2: per-channel select, HW-tiled."""
    rgb = rgb_ref[...]                                   # (1, C, hw_t)
    ir = ir_ref[...]
    m = mask_ref[...]                                    # (1, 2, C) f32 {0,1}
    m_rgb = m[:, 0, :, None] > 0.5                       # (1, C, 1)
    m_ir = m[:, 1, :, None] > 0.5
    out_ref[:, 0] = jnp.where(m_rgb, rgb, ir)
    out_ref[:, 1] = jnp.where(m_ir, ir, rgb)


# --------------------------------------------------------------------------- #
# Tiling / VMEM policy
# --------------------------------------------------------------------------- #
def _detect_vmem_capacity():
    try:
        info = pltpu.get_tpu_info()
        cap = getattr(info, "vmem_capacity_bytes", None)
        if cap:
            return int(cap)
    except Exception:
        pass
    return 64 << 20  # conservative: v7x per-TC VMEM


def _vmem_policy():
    """(working-set budget, scoped vmem_limit_bytes) derived from the chip."""
    cap = _detect_vmem_capacity()
    if cap >= (128 << 20):           # v5e / v6e: 128 MiB physical VMEM
        return 40 << 20, 64 << 20
    return 24 << 20, 48 << 20        # v7x (64 MiB per TC) or unknown


def _pick_tiles(B, C, HW, itemsize, budget_bytes):
    """(tb, tc) for the single-pass path.

    Per (batch, channel) row per step: rgb + ir inputs + 2 output halves = 4 slabs
    of HW elems, each double-buffered by the pipeline => 8 * HW * itemsize bytes.
    Channel tile must be a multiple of 8 (sublane rule) unless it equals full C.
    """
    per_bc = 8 * HW * itemsize
    max_bc = max(1, budget_bytes // per_bc)      # max tb*tc product in budget
    if C <= max_bc:
        tc = C
    else:
        tc = min(C, max(8, (max_bc // 8) * 8))
    tb = max(1, min(B, max_bc // max(tc, 1)))
    return tb, tc


# --------------------------------------------------------------------------- #
# Wrappers
# --------------------------------------------------------------------------- #
def _two_pass_switch(params, rgb2, ir2, *, B, C, HW, itemsize, budget, vmem_limit,
                     out_dtype):
    """Fallback for huge H*W: pass 1 computes masks, pass 2 streams the selects."""
    # Pass-2 working set per step: rgb + ir + 2 output halves, double-buffered
    #   = 8 * C * hw_t * itemsize bytes.
    max_hw = max(128, budget // (8 * C * itemsize))
    hw_t = max(128, (max_hw // 128) * 128)       # multiple of 128 (lane rule)
    if hw_t >= HW:
        hw_t = HW                                # full lane extent is always legal
    n_hw = pl.cdiv(HW, hw_t)

    masks = pl.pallas_call(
        _make_gap_mask_kernel(HW, hw_t),
        out_shape=jax.ShapeDtypeStruct((B, 2, C), jnp.float32),
        grid=(B, n_hw),
        in_specs=[
            pl.BlockSpec(memory_space=pltpu.MemorySpace.SMEM),          # params
            pl.BlockSpec((1, C, hw_t), lambda b, h: (b, 0, h)),         # RGB
            pl.BlockSpec((1, C, hw_t), lambda b, h: (b, 0, h)),         # IR
        ],
        out_specs=pl.BlockSpec((1, 2, C), lambda b, h: (b, 0, 0)),
        scratch_shapes=[pltpu.VMEM((1, 2, C), jnp.float32)],
        compiler_params=pltpu.CompilerParams(
            dimension_semantics=("parallel", "arbitrary"),
            vmem_limit_bytes=vmem_limit,
        ),
    )(params, rgb2, ir2)

    out = pl.pallas_call(
        select_kernel,
        out_shape=jax.ShapeDtypeStruct((B, 2, C, HW), out_dtype),
        grid=(B, n_hw),
        in_specs=[
            pl.BlockSpec((1, 2, C), lambda b, h: (b, 0, 0)),            # masks
            pl.BlockSpec((1, C, hw_t), lambda b, h: (b, 0, h)),         # RGB
            pl.BlockSpec((1, C, hw_t), lambda b, h: (b, 0, h)),         # IR
        ],
        out_specs=pl.BlockSpec((1, 2, C, hw_t), lambda b, h: (b, 0, 0, h)),
        compiler_params=pltpu.CompilerParams(
            dimension_semantics=("parallel", "parallel"),
            vmem_limit_bytes=vmem_limit,
        ),
    )(masks, rgb2, ir2)
    return out


def channel_switching_pallas(rgb, ir, params, *, budget_bytes=None,
                             vmem_limit_bytes=None, force_two_pass=False):
    """rgb, ir: (B, C, H, W); params: f32[4] = [w_rgb, b_rgb, w_ir, b_ir]."""
    B, C, H, W = rgb.shape
    HW = H * W
    itemsize = jnp.dtype(rgb.dtype).itemsize

    default_budget, default_limit = _vmem_policy()
    budget = default_budget if budget_bytes is None else int(budget_bytes)
    vmem_limit = default_limit if vmem_limit_bytes is None else int(vmem_limit_bytes)

    # Flatten spatial dims so the lane axis is dense (free, contiguous reshape).
    rgb2 = rgb.reshape(B, C, HW)
    ir2 = ir.reshape(B, C, HW)

    per_bc = 8 * HW * itemsize
    min_tc = C if C < 8 else 8
    use_two_pass = force_two_pass or (per_bc * min_tc > budget and HW > 128)

    if use_two_pass:
        out = _two_pass_switch(params, rgb2, ir2, B=B, C=C, HW=HW,
                               itemsize=itemsize, budget=budget,
                               vmem_limit=vmem_limit, out_dtype=rgb.dtype)
    else:
        tb, tc = _pick_tiles(B, C, HW, itemsize, budget)
        # Best-effort >= 2 grid steps so both v7x TensorCores get work (near
        # free elsewhere: one extra ~0.35us step).
        if pl.cdiv(B, tb) * pl.cdiv(C, tc) == 1:
            if B >= 2:
                tb = pl.cdiv(B, 2)
            elif C >= 16:
                tc = max(8, ((C // 2) // 8) * 8)
        grid = (pl.cdiv(B, tb), pl.cdiv(C, tc))

        out = pl.pallas_call(
            cs_kernel,
            out_shape=jax.ShapeDtypeStruct((B, 2, C, HW), rgb.dtype),
            grid=grid,
            in_specs=[
                pl.BlockSpec(memory_space=pltpu.MemorySpace.SMEM),      # params
                pl.BlockSpec((tb, tc, HW), lambda b, c: (b, c, 0)),     # RGB
                pl.BlockSpec((tb, tc, HW), lambda b, c: (b, c, 0)),     # IR
            ],
            out_specs=pl.BlockSpec((tb, 2, tc, HW), lambda b, c: (b, 0, c, 0)),
            compiler_params=pltpu.CompilerParams(
                dimension_semantics=("parallel", "parallel"),
                vmem_limit_bytes=vmem_limit,
            ),
        )(params, rgb2, ir2)

    # (B, 2, C, HW) -> (B, 2C, H, W) == torch.cat([switch_RGB, switch_IR], dim=1).
    return out.reshape(B, 2 * C, H, W)


def channel_switching_ref(rgb, ir, params):
    """Pure-JAX reference mirroring the PyTorch forward."""
    w_r, b_r, w_i, b_i = params[0], params[1], params[2], params[3]
    gap_r = jnp.mean(rgb, axis=(2, 3), keepdims=True)
    gap_i = jnp.mean(ir, axis=(2, 3), keepdims=True)
    wr = jax.nn.sigmoid(w_r * gap_r + b_r)
    wi = jax.nn.sigmoid(w_i * gap_i + b_i)
    switch_rgb = jnp.where(wr > 0.5, rgb, ir)
    switch_ir = jnp.where(wi > 0.5, ir, rgb)
    return jnp.concatenate([switch_rgb, switch_ir], axis=1)


# --------------------------------------------------------------------------- #
# Self-test
# --------------------------------------------------------------------------- #
if __name__ == "__main__":
    key = jax.random.PRNGKey(0)
    k_rgb, k_ir, k_p, k_rgb2, k_ir2, k_rgb3, k_ir3 = jax.random.split(key, 7)

    # Conv1d(1,1,1) params for RGB_ECA / IR_ECA: scalar weight + scalar bias each.
    p = jax.random.normal(k_p, (4,), dtype=jnp.float32) * 0.5
    params = jnp.asarray(p, dtype=jnp.float32)

    # Test A: primary single-pass path at the module's nominal small shape.
    B, C, H, W = 2, 4, 16, 16
    rgb = jax.random.normal(k_rgb, (B, C, H, W), dtype=jnp.float32)
    ir = jax.random.normal(k_ir, (B, C, H, W), dtype=jnp.float32)
    out = jax.block_until_ready(channel_switching_pallas(rgb, ir, params))
    ref = jax.block_until_ready(channel_switching_ref(rgb, ir, params))
    assert out.shape == (B, 2 * C, H, W)
    np.testing.assert_allclose(np.asarray(out), np.asarray(ref), rtol=1e-6, atol=1e-6)

    # Test B: single-pass path with a tiny budget to exercise channel tiling and
    # ragged (cdiv) channel blocks.
    Bb, Cb, Hb, Wb = 2, 12, 8, 16
    rgb_b = jax.random.normal(k_rgb2, (Bb, Cb, Hb, Wb), dtype=jnp.float32)
    ir_b = jax.random.normal(k_ir2, (Bb, Cb, Hb, Wb), dtype=jnp.float32)
    out_b = jax.block_until_ready(
        channel_switching_pallas(rgb_b, ir_b, params, budget_bytes=32 * 1024))
    ref_b = jax.block_until_ready(channel_switching_ref(rgb_b, ir_b, params))
    np.testing.assert_allclose(np.asarray(out_b), np.asarray(ref_b),
                               rtol=1e-6, atol=1e-6)

    # Test C: two-pass (huge-HW) fallback path, forced, with a ragged HW tile.
    Bc, Cc, Hc, Wc = 1, 4, 10, 20
    rgb_c = jax.random.normal(k_rgb3, (Bc, Cc, Hc, Wc), dtype=jnp.float32)
    ir_c = jax.random.normal(k_ir3, (Bc, Cc, Hc, Wc), dtype=jnp.float32)
    out_c = jax.block_until_ready(
        channel_switching_pallas(rgb_c, ir_c, params, force_two_pass=True,
                                 budget_bytes=16 * 1024))
    ref_c = jax.block_until_ready(channel_switching_ref(rgb_c, ir_c, params))
    np.testing.assert_allclose(np.asarray(out_c), np.asarray(ref_c),
                               rtol=1e-6, atol=1e-6)

    print("KERNEL_OK")
</pallas_src>

<mosaic_0001>
module attributes {stable_mosaic.version = 11 : i64} {
  func.func @cs_kernel(%arg0: i32, %arg1: i32, %arg2: memref<4xf32, #tpu.memory_space<smem>>, %arg3: memref<1x4x256xf32, #tpu.memory_space<vmem>>, %arg4: memref<1x4x256xf32, #tpu.memory_space<vmem>>, %arg5: memref<1x2x4x256xf32, #tpu.memory_space<vmem>>) attributes {dimension_semantics = [#tpu.dimension_semantics<parallel>, #tpu.dimension_semantics<parallel>], iteration_bounds = array<i64: 2, 1>, scalar_prefetch = 0 : i64, scratch_operands = 0 : i64, tpu.core_type = #tpu.core_type<tc>, window_params = [{transform_indices = @transform_0, window_bounds = array<i64: 4>}, {transform_indices = @transform_1, window_bounds = array<i64: 1, 4, 256>}, {transform_indices = @transform_2, window_bounds = array<i64: 1, 4, 256>}, {transform_indices = @transform_3, window_bounds = array<i64: 1, 2, 4, 256>}]} {
    %c0 = arith.constant 0 : index
    %c0_0 = arith.constant 0 : index
    %c0_1 = arith.constant 0 : index
    %0 = vector.load %arg3[%c0, %c0_0, %c0_1] : memref<1x4x256xf32, #tpu.memory_space<vmem>>, vector<1x4x256xf32>
    %c0_2 = arith.constant 0 : index
    %c0_3 = arith.constant 0 : index
    %c0_4 = arith.constant 0 : index
    %1 = vector.load %arg4[%c0_2, %c0_3, %c0_4] : memref<1x4x256xf32, #tpu.memory_space<vmem>>, vector<1x4x256xf32>
    %cst = arith.constant dense<0.000000e+00> : vector<1x4xf32>
    %2 = vector.multi_reduction <add>, %0, %cst [2] : vector<1x4x256xf32> to vector<1x4xf32>
    %3 = vector.shape_cast %2 : vector<1x4xf32> to vector<1x4x1xf32>
    %cst_5 = arith.constant 3.906250e-03 : f32
    %4 = vector.broadcast %cst_5 : f32 to vector<1x4x1xf32>
    %5 = arith.mulf %3, %4 : vector<1x4x1xf32>
    %cst_6 = arith.constant dense<0.000000e+00> : vector<1x4xf32>
    %6 = vector.multi_reduction <add>, %1, %cst_6 [2] : vector<1x4x256xf32> to vector<1x4xf32>
    %7 = vector.shape_cast %6 : vector<1x4xf32> to vector<1x4x1xf32>
    %cst_7 = arith.constant 3.906250e-03 : f32
    %8 = vector.broadcast %cst_7 : f32 to vector<1x4x1xf32>
    %9 = arith.mulf %7, %8 : vector<1x4x1xf32>
    %c0_8 = arith.constant 0 : index
    %10 = memref.load %arg2[%c0_8] : memref<4xf32, #tpu.memory_space<smem>>
    %11 = vector.broadcast %10 : f32 to vector<1x4x1xf32>
    %12 = arith.mulf %11, %5 : vector<1x4x1xf32>
    %c1 = arith.constant 1 : index
    %13 = memref.load %arg2[%c1] : memref<4xf32, #tpu.memory_space<smem>>
    %14 = vector.broadcast %13 : f32 to vector<1x4x1xf32>
    %15 = arith.addf %12, %14 : vector<1x4x1xf32>
    %cst_9 = arith.constant 0.000000e+00 : f32
    %16 = vector.broadcast %cst_9 : f32 to vector<1x4x1xf32>
    %17 = arith.cmpf ogt, %15, %16 : vector<1x4x1xf32>
    %c2 = arith.constant 2 : index
    %18 = memref.load %arg2[%c2] : memref<4xf32, #tpu.memory_space<smem>>
    %19 = vector.broadcast %18 : f32 to vector<1x4x1xf32>
    %20 = arith.mulf %19, %9 : vector<1x4x1xf32>
    %c3 = arith.constant 3 : index
    %21 = memref.load %arg2[%c3] : memref<4xf32, #tpu.memory_space<smem>>
    %22 = vector.broadcast %21 : f32 to vector<1x4x1xf32>
    %23 = arith.addf %20, %22 : vector<1x4x1xf32>
    %cst_10 = arith.constant 0.000000e+00 : f32
    %24 = vector.broadcast %cst_10 : f32 to vector<1x4x1xf32>
    %25 = arith.cmpf ogt, %23, %24 : vector<1x4x1xf32>
    %26 = vector.shape_cast %17 : vector<1x4x1xi1> to vector<1x4x1xi1>
    %27 = vector.broadcast %26 : vector<1x4x1xi1> to vector<1x4x256xi1>
    %28 = arith.select %27, %0, %1 : vector<1x4x256xi1>, vector<1x4x256xf32>
    %c0_11 = arith.constant 0 : index
    %c0_12 = arith.constant 0 : index
    %c0_13 = arith.constant 0 : index
    %c0_14 = arith.constant 0 : index
    %29 = vector.load %arg5[%c0_11, %c0_12, %c0_13, %c0_14] : memref<1x2x4x256xf32, #tpu.memory_space<vmem>>, vector<1x1x4x256xf32>
    %30 = vector.shape_cast %29 : vector<1x1x4x256xf32> to vector<1x4x256xf32>
    %31 = vector.shape_cast %28 : vector<1x4x256xf32> to vector<1x1x4x256xf32>
    tpu.vector_store %arg5[%c0_11, %c0_12, %c0_13, %c0_14], %31 {strides = array<i32>} : memref<1x2x4x256xf32, #tpu.memory_space<vmem>>, vector<1x1x4x256xf32>,
    %32 = vector.shape_cast %25 : vector<1x4x1xi1> to vector<1x4x1xi1>
    %33 = vector.broadcast %32 : vector<1x4x1xi1> to vector<1x4x256xi1>
    %34 = arith.select %33, %1, %0 : vector<1x4x256xi1>, vector<1x4x256xf32>
    %c0_15 = arith.constant 0 : index
    %c1_16 = arith.constant 1 : index
    %c0_17 = arith.constant 0 : index
    %c0_18 = arith.constant 0 : index
    %35 = vector.load %arg5[%c0_15, %c1_16, %c0_17, %c0_18] : memref<1x2x4x256xf32, #tpu.memory_space<vmem>>, vector<1x1x4x256xf32>
    %36 = vector.shape_cast %35 : vector<1x1x4x256xf32> to vector<1x4x256xf32>
    %37 = vector.shape_cast %34 : vector<1x4x256xf32> to vector<1x1x4x256xf32>
    tpu.vector_store %arg5[%c0_15, %c1_16, %c0_17, %c0_18], %37 {strides = array<i32>} : memref<1x2x4x256xf32, #tpu.memory_space<vmem>>, vector<1x1x4x256xf32>,
    return
  }
  func.func @transform_0(%arg0: i32, %arg1: i32) -> i32 {
    %c0_i32 = arith.constant 0 : i32
    %c0_i32_0 = arith.constant 0 : i32
    return %c0_i32 : i32
  }
  func.func @transform_1(%arg0: i32, %arg1: i32) -> (i32, i32, i32) {
    %c0_i32 = arith.constant 0 : i32
    %c0_i32_0 = arith.constant 0 : i32
    return %arg0, %arg1, %c0_i32 : i32, i32, i32
  }
  func.func @transform_2(%arg0: i32, %arg1: i32) -> (i32, i32, i32) {
    %c0_i32 = arith.constant 0 : i32
    %c0_i32_0 = arith.constant 0 : i32
    return %arg0, %arg1, %c0_i32 : i32, i32, i32
  }
  func.func @transform_3(%arg0: i32, %arg1: i32) -> (i32, i32, i32, i32) {
    %c0_i32 = arith.constant 0 : i32
    %c0_i32_0 = arith.constant 0 : i32
    %c0_i32_1 = arith.constant 0 : i32
    return %arg0, %c0_i32, %arg1, %c0_i32_0 : i32, i32, i32, i32
  }
}

</mosaic_0001>

<bundles_post_ra>
// kernel: tpu_custom_call.1
= control target key start
LH: loop header
LB: loop body
LE: loop exit
PB: predicated region body
PF: predicated region fallthrough
CT: control target
= control target key end

     0   :  { %s947_s0 = inlined_call_operand.hbm [shape: f32[4], index: 0, kind: input, shape index: {}]   ;;  %s948_s1 = inlined_call_operand.hbm [shape: f32[2,4,256], index: 1, kind: input, shape index: {}]   ;;  %s949_s2 = inlined_call_operand.hbm [shape: f32[2,4,256], index: 2, kind: input, shape index: {}]   ;;  %s950_s3 = inlined_call_operand.hbm [shape: f32[2,2,4,256], index: 3, kind: output, shape index: {}]  }
   0x1   :  { %951 = sst [smem:[#allocation14_spill]] %s947_s0 }
   0x2   :  { %8 = vsyncpa [#allocation5], 0 }
   0x3   :  { %9 = vsyncpa [#allocation3], 0 }
   0x4   :  { %11 = vsyncpa [#allocation3 + $0x1], 0 }
   0x5   :  { %12 = vsyncpa [#allocation8], 0 }
   0x6   :  { %14 = vsyncpa [#allocation8 + $0x1], 0 }
   0x7   :  { %15 = vsyncpa [#allocation4], 0 }
   0x8   :  { %17 = vsyncpa [#allocation4 + $0x1], 0  ;;  %s747_s12 = smov 0   ;;  %s749_s13 = smov 0  }
   0x9   :  { %s751_s14 = smov 0   ;;  %s753_s15 = smov 0  }
   0xa   :  { %s755_s16 = smov 0   ;;  %s757_s17 = smov 0  }
   0xb LB: > { %s454_s18 = sadd.s32 4294967295, %s719_s17   ;;  %s455_s19 = sadd.s32 4294967294, %s719_s17   ;;  %s719_s17 = sphi %s757_s17, %s23_s17   ;;  %s715_s16 = sphi %s755_s16, %s966_s16   ;;  %s711_s15 = sphi %s753_s15, %s965_s15   ;;  %s707_s14 = sphi %s751_s14, %s964_s14   ;;  %s703_s13 = sphi %s749_s13, %s963_s13   ;;  %s699_s12 = sphi %s747_s12, %s962_s12  }
   0xc   : > { %p72_p0 = scmp.ne.s32.totalorder %s707_s14, %s703_s13  ;;  %p78_p1 = scmp.ne.s32.totalorder %s703_s13, %s699_s12 }
   0xd   : > { %p783_p2 = scmp.eq.s32.totalorder %s454_s18, 0  ;;  %p132_p3 = scmp.eq.s32.totalorder %s454_s18, 1 }
   0xe   : > { %p138_p4 = scmp.eq.s32.totalorder %s455_s19, 1  ;;  %p456_p5 = scmp.ge.s32.totalorder %s719_s17, 1 }
   0xf   : > { %p790_p6 = por %p783_p2, %p78_p1  ;;  %p797_p7 = por %p132_p3, %p72_p0 }
  0x10   : > { %p801_p8 = por %p138_p4, %p78_p1  ;;  %p145_p9 = scmp.lt.s32.totalorder %s719_s17, 3 }
  0x11   : > { %s65_s25 = sadd.s32 1, %s707_s14  ;;  %s35_s26 = sadd.s32 1, %s715_s16 }
  0x12   : > { %s955_s23 = scalar_select %p801_p8, 1, 0 }
  0x13   : > { %p806_p10 = pnand %p456_p5, %p145_p9  ;;  %p73_p13 = scmp.eq.s32.totalorder %s719_s17, 0 }
  0x14   : > { %p37_p3 = scmp.ge.s32.totalorder %s35_s26, 2  ;;  %p508_p5 = scmp.lt.s32.totalorder %s719_s17, 2 }
  0x15   : > { %p492_p12 = pneg %p806_p10  ;;  %p821_p4 = por %p73_p13, %p72_p0 }
  0x16   : > { %s827_s28 = sand.u32 1, %s707_s14   ;;  %s721_s29 = smov [#allocation2]  }
  0x17   : > { %p493_p1 = pnand %p492_p12, %p783_p2  ;;  %s958_s0 = sld [smem:[#allocation14_spill]] }
  0x18   : > { %s968_s26 = smov (%p37_p3, %s35_s26), 0  ;;  %s459_s5 = sshll.u32 %s827_s28, 3 }
  0x19   : > { %s60_s6 = ssub.s32 %s715_s16, %s968_s26  ;;  %s479_s7 = sshll.u32 %s715_s16, 7 }
  0x1a   : > { %p63_p0 = scmp.eq.s32.totalorder %s60_s6, 0  ;;  %s179_s10 = scalar_lea.hbm %s948_s1, %s479_s7 }
  0x1b   : > { %s171_s11 = scalar_lea.vmem [#allocation6], %s459_s5  ;;  %p848_p9 = pnand %p508_p5, %p821_p4 }
  0x1c   : > { %s181_s18 = sshll.u32 %s171_s11, 4  ;;  %s855_s6 = scalar_lea.hbm %s949_s2, %s479_s7  ;;  %s182_s18 = int_to_ptr.vmem [resolvable:$true] %s181_s18 }
  0x1d   : > { %495 = dma.hbm_to_smem (!%p493_p1), %s958_s0, 16, %s721_s29, [#allocation5]  }
  0x1e   : > { %s842_s19 = scalar_select %p63_p0, %s707_s14, %s65_s25  }
  0x1f   : > { %s168_s8 = scalar_lea.sflag [#allocation3], %s827_s28  ;;  %p577_p12 = pneg %p848_p9 }
  0x20   : > { %s588_s9 = scalar_lea.vmem %s182_s18, 128  ;;  %s722_s25 = smov [#allocation6]  }
  0x21   : > { %p589_p13 = scmp.ne.s32.totalorder %s182_s18, %s588_s9  ;;  %s593_s27 = sshll.u32 %s722_s25, 4  ;;  %s594_s27 = int_to_ptr.vmem [resolvable:$false] %s593_s27 }
  0x22   : > { %s595_s11 = scalar_lea.vmem %s594_s27, 256  ;;  %p596_p4 = scmp.lt.s32.totalorder %s182_s18, %s594_s27 }
  0x23   : > { %p591_p1 = pnand %p589_p13, %p577_p12  ;;  %p597_p5 = scmp.lt.s32.totalorder %s595_s11, %s588_s9 }
  0x25   : > { %p592_p3 = pneg %p591_p1  ;;  %p598_p0 = por %p597_p5, %p596_p4 }
  0x27   : > { %p599_p11 = pnand %p598_p0, %p592_p3 }
  0x29   : > { %602 = shalt.err (!%p599_p11)
}
  0x2a   : > { %499 = dma.hbm_to_vmem [thread:$0]  (!%p848_p9), %s179_s10, 128, %s182_s18, %s168_s8  }
  0x2b   : > { %s192_s7 = scalar_lea.vmem [#allocation7], %s459_s5  ;;  %s189_s4 = scalar_lea.sflag [#allocation8], %s827_s28 }
  0x2c   : > { %s202_s30 = sshll.u32 %s192_s7, 4  ;;  %s723_s25 = smov [#allocation7]   ;;  %s203_s30 = int_to_ptr.vmem [resolvable:$true] %s202_s30 }
  0x2d   : > { %s616_s0 = scalar_lea.vmem %s203_s30, 128  ;;  %s621_s9 = sshll.u32 %s723_s25, 4  ;;  %s622_s9 = int_to_ptr.vmem [resolvable:$false] %s621_s9 }
  0x2e   : > { %p617_p13 = scmp.ne.s32.totalorder %s203_s30, %s616_s0  ;;  %s623_s27 = scalar_lea.vmem %s622_s9, 256 }
  0x2f   : > { %p624_p11 = scmp.lt.s32.totalorder %s203_s30, %s622_s9  ;;  %p625_p3 = scmp.lt.s32.totalorder %s623_s27, %s616_s0 }
  0x30   : > { %p619_p1 = pnand %p617_p13, %p577_p12 }
  0x31   : > { %p626_p4 = por %p625_p3, %p624_p11 }
  0x32   : > { %p620_p8 = pneg %p619_p1 }
  0x34   : > { %p627_p5 = pnand %p626_p4, %p620_p8 }
  0x36   : > { %630 = shalt.err (!%p627_p5)
}
  0x37   : > { %502 = dma.hbm_to_vmem [thread:$0]  (!%p848_p9), %s855_s6, 128, %s203_s30, %s189_s4  }
  0x38   : > { %211 = sbr.rel (%p806_p10) target bundleno = 242 (0xf2), region = 32 }
  0x3d   : > { %682 = dma.done.wait (%p783_p2), [#allocation5], 16  }
  0x3e   : > { %684 = vsyncadd (%p783_p2), [#allocation5], 4294967280  ;;  %s879_s28 = sand.u32 1, %s703_s13  }
  0x3f   : > { %s467_s0 = sshll.u32 %s879_s28, 3  ;;  %s218_s5 = scalar_lea.sflag [#allocation3], %s879_s28 }
  0x40   : > { %s221_s10 = scalar_lea.vmem [#allocation6], %s467_s0 }
  0x41   : > { %686 = dma.done.wait (%p790_p6), %s218_s5, 128  }
  0x42   : > { %688 = vsyncadd (%p790_p6), %s218_s5, 4294967168  ;;  %s227_s24 = scalar_lea.sflag [#allocation8], %s879_s28  ;;  %s230_s18 = scalar_lea.vmem [#allocation7], %s467_s0 }
  0x43   : > { %690 = dma.done.wait (%p790_p6), %s227_s24, 128  }
  0x44   : > { %692 = vsyncadd (%p790_p6), %s227_s24, 4294967168 }
  0x45   : > { %235 = sfence }
  0x46   : > { %v259_v0 = vld [vmem:[%s221_s10] sm:$0xff]  ;;  %vm264_vm0 = vcmask 1043456   ;;  %v260_v1 = vld [vmem:[%s230_s18] sm:$0xff]  ;;  %s280_s20 = sld [smem:[#allocation2]]  ;;  %s469_s8 = sshll.u32 %s879_s28, 4 }
  0x47   : > { %v262_v2 = vcombine.high %v259_v0, %v259_v0  ;;  %v265_v3 = vsel %vm264_vm0, %v259_v0, 0.0  ;;  %v272_v4 = vcombine.high %v260_v1, %v260_v1  ;;  %v274_v6 = vsel %vm264_vm0, %v260_v1, 0.0  ;;  %s470_s29 = sld [smem:[#allocation2 + $0x1]]  ;;  %s481_s11 = sshll.u32 %s711_s15, 8 }
  0x48   : > { %s471_s6 = sld [smem:[#allocation2 + $0x2]]  ;;  %s258_s7 = scalar_lea.vmem [#allocation9], %s469_s8 }
  0x49   : > { %v266_v5 = vsel %vm264_vm0, %v262_v2, 0.0  ;;  %v275_v7 = vsel %vm264_vm0, %v272_v4, 0.0  ;;  %s472_s21 = sld [smem:[#allocation2 + $0x3]]  ;;  %s329_s30 = sshll.u32 %s258_s7, 4  ;;  %s899_s30 = int_to_ptr.vmem [resolvable:$true] %s329_s30 }
  0x4a   : > { %v267_v8 = vadd.f32 %v266_v5, %v265_v3  ;;  %v276_v9 = vadd.f32 %v275_v7, %v274_v6  ;;  %s897_s9 = scalar_lea.hbm %s950_s3, %s481_s11  ;;  %s314_s27 = scalar_lea.sflag [#allocation4], %s879_s28 }
  0x4b   : > { %s631_s15 = scalar_lea.vmem %s899_s30, 256  ;;  %s724_s0 = smov [#allocation9]  }
  0x4c   : > { %268 = vadd.xlane.f32.xlu0 %v267_v8  ;;  %v281_v10 = vstv %s280_s20  ;;  %p632_p2 = scmp.ne.s32.totalorder %s899_s30, %s631_s15  ;;  %s635_s5 = sshll.u32 %s724_s0, 4  ;;  %s636_s5 = int_to_ptr.vmem [resolvable:$false] %s635_s5 }
  0x4d   : > { %v284_v13 = vstv %s470_s29  ;;  %s637_s10 = scalar_lea.vmem %s636_s5, 512  ;;  %p638_p10 = scmp.lt.s32.totalorder %s899_s30, %s636_s5 }
  0x4e   : > { %v288_v15 = vstv %s471_s6  ;;  %p633_p6 = pnand %p632_p2, %p797_p7  ;;  %p639_p9 = scmp.lt.s32.totalorder %s637_s10, %s631_s15 }
  0x4f   : > { %v291_v19 = vstv %s472_s21 }
  0x50   : > { %277 = vadd.xlane.f32.xlu0 %v276_v9  ;;  %p634_p8 = pneg %p633_p6  ;;  %p640_p12 = por %p639_p9, %p638_p10 }
  0x52   : > { %p641_p0 = pnand %p640_p12, %p634_p8 }
  0xd5   : > { %v269_v11 = vpop.xlane.xlu0 %268 }
  0xd6   : > { %v270_v12 = vmul.f32 0.00390625, %v269_v11 }
  0xd8   : > { %v282_v14 = vmul.f32 %v281_v10, %v270_v12 }
  0xd9   : > { %v278_v16 = vpop.xlane.xlu0 %277 }
  0xda   : > { %v285_v17 = vadd.f32 %v284_v13, %v282_v14  ;;  %v279_v18 = vmul.f32 0.00390625, %v278_v16 }
  0xdc   : > { %vm286_vm1 = vcmp.gt.f32.partialorder %v285_v17, 0.0  ;;  %v289_v20 = vmul.f32 %v288_v15, %v279_v18 }
  0xdd   : > { %v296_v21 = vsel %vm286_vm1, %v259_v0, %v260_v1  ;;  %v297_v22 = vsel %vm286_vm1, %v262_v2, %v272_v4 }
  0xde   : > { %v300_v23 = vcombine.low %v296_v21, %v297_v22  ;;  %v292_v24 = vadd.f32 %v291_v19, %v289_v20 }
  0xe0   : > { %302 = vst [vmem:[%s258_s7] sm:$0xff] %v300_v23  ;;  %vm293_vm2 = vcmp.gt.f32.partialorder %v292_v24, 0.0 }
  0xe1   : > { %v305_v25 = vsel %vm293_vm2, %v260_v1, %v259_v0  ;;  %v306_v26 = vsel %vm293_vm2, %v272_v4, %v262_v2 }
  0xe2   : > { %v309_v27 = vcombine.low %v305_v25, %v306_v26 }
  0xe4   : > { %473 = vst [vmem:[%s258_s7 + $0x8] sm:$0xff] %v309_v27 }
  0xe5   : > { %644 = shalt.err (!%p641_p0)
}
  0xe6   : > { %s645_s24 = scalar_lea.hbm %s897_s9, 256  ;;  %s649_s29 = scalar_lea.hbm %s950_s3, 512 }
  0xe7   : > { %p646_p13 = scmp.ne.s32.totalorder %s897_s9, %s645_s24  ;;  %p650_p3 = scmp.lt.s32.totalorder %s897_s9, %s950_s3 }
  0xe8   : > { %p651_p4 = scmp.lt.s32.totalorder %s649_s29, %s645_s24 }
  0xe9   : > { %p647_p1 = pnand %p646_p13, %p797_p7 }
  0xea   : > { %p652_p5 = por %p651_p4, %p650_p3 }
  0xeb   : > { %p648_p11 = pneg %p647_p1 }
  0xed   : > { %p653_p2 = pnand %p652_p5, %p648_p11 }
  0xef   : > { %656 = shalt.err (!%p653_p2)
}
  0xf0   : > { %s725_s8 = smov 128   ;;  %s726_s11 = smov 8  }
  0xf1   : > { %490 = dma.vmem_to_hbm [thread:$0]  (%p797_p7), %s899_s30, 256, %s897_s9, %s314_s27, %s725_s8, %s725_s8, %s726_s11  }
  0xf2 PF: > { %s344_s7 = sand.u32 1, %s699_s12   ;;  %p960_p6 = scmp.ne.s32.totalorder %s955_s23, 0 }
  0xf3   : > { %p961_p8 = scmp.ge.s32.totalorder %s719_s17, 2  ;;  %s345_s4 = scalar_lea.sflag [#allocation4], %s344_s7 }
  0xf5   : > { %p504_p10 = pnand %p961_p8, %p960_p6 }
  0xf7   : > { %p505_p9 = pneg %p504_p10 }
  0xf9   : > { %694 = dma.done.wait (%p505_p9), %s345_s4, 256  }
  0xfa   : > { %696 = vsyncadd (%p505_p9), %s345_s4, 4294967040  ;;  %s23_s17 = sadd.s32 1, %s719_s17   ;;  %s962_s12 = smov %s703_s13 }
  0xfb   : > { %p20_p12 = scmp.ge.s32.totalorder %s23_s17, 4   ;;  %s963_s13 = smov %s707_s14 }
  0xfc   : > { %s964_s14 = smov %s842_s19  ;;  %s965_s15 = smov %s715_s16 }
  0xfd   : > { %s966_s16 = smov %s968_s26  ;;  %22 = sbr.rel (!%p20_p12) target bundleno = 11 (0xb), region = 96 }
 0x102   :  { %350 = vsyncpa [#allocation3], 1 }
 0x103   :  { %352 = vsyncpa [#allocation3 + $0x1], 1 }
 0x104   :  { %353 = vsyncpa [#allocation8], 1 }
 0x105   :  { %355 = vsyncpa [#allocation8 + $0x1], 1 }
 0x106   :  { %356 = vsyncpa [#allocation4], 1 }
 0x107   :  { %358 = vsyncpa [#allocation4 + $0x1], 1 }
 0x108   :  { %359 = vsyncpa [#allocation5], 1 }
 0x109   :  { %361 = vsyncpa [#allocation5 + $0x1], 1 }

</bundles_post_ra>
